<compile_context>
chip_gen: v7x
topology: tpu7x:2x2x1
jax: 0.10.0
libtpu: 0.0.40
codegen_flags: <defaults>
</compile_context>

<pallas_src>
import jax
import jax.numpy as jnp
from jax.experimental import pallas as pl
from jax.experimental.pallas import tpu as pltpu

EPS = 1e-5
D_IN, D_H1, D_H2, D_OUT = 16, 24, 12, 10

# Primary tuning knob.  4096 keeps per-tile VMEM (~20 MiB with double
# buffering and 128-lane padding of the (tile_b, 16/24/12/10) blocks) inside
# the explicit 48 MiB scoped-VMEM limit on every generation (v5e/v6e/v7x).
MAX_TILE_B = 4096
VMEM_LIMIT_BYTES = 48 * 1024 * 1024


def net_kernel(x_ref, w1_ref, b1_ref, w2_ref, b2_ref, w3_ref, b3_ref, o_ref):
    # fc1 (+ folded bn1) + relu; dropout(p=0.1) is identity at inference.
    h = jnp.dot(x_ref[...], w1_ref[...], preferred_element_type=jnp.float32)
    h = jnp.maximum(h + b1_ref[...], 0.0)
    # fc2 (+ folded bn2) + relu
    h = jnp.dot(h, w2_ref[...], preferred_element_type=jnp.float32)
    h = jnp.maximum(h + b2_ref[...], 0.0)
    # fc3 — store the narrow (tile_b, 10) block directly (masked vst is free:
    # the kernel is HBM/step-overhead bound, and this cuts writeback ~12.8x).
    o_ref[...] = (jnp.dot(h, w3_ref[...], preferred_element_type=jnp.float32)
                  + b3_ref[...])


def fold_bn_into_linear(w, b, gamma, beta, mean, var):
    """Fold eval-mode BatchNorm1d into the preceding Linear.

    w: [in, out] (pre-transposed for x @ W); b/gamma/beta/mean/var: [out]."""
    scale = gamma * jax.lax.rsqrt(var + EPS)
    w_f = (w * scale[None, :]).astype(jnp.float32)
    b_f = ((b - mean) * scale + beta).astype(jnp.float32)
    return w_f, b_f


def _round_up(x, m):
    return ((x + m - 1) // m) * m


def _choose_tiling(batch, max_tile_b):
    """Pick (n_tiles, tile_b) so tail padding is < 8 rows per tile and large
    batches produce >= 2 tiles (keeps both v7x TensorCores busy)."""
    n_tiles = max(1, -(-batch // max_tile_b))
    if n_tiles == 1 and batch >= 1024:
        n_tiles = 2
    tile_b = _round_up(-(-batch // n_tiles), 8)
    return n_tiles, tile_b


def net_forward(x, params, *, max_tile_b=MAX_TILE_B, use_bf16=False):
    """x: [B, 16].  params: raw (unfolded) parameters, see init_params."""
    (w1, b1, g1, be1, m1, v1,
     w2, b2, g2, be2, m2, v2,
     w3, b3) = params

    # Host-side BN folding (constants at inference).
    w1f, b1f = fold_bn_into_linear(w1, b1, g1, be1, m1, v1)
    w2f, b2f = fold_bn_into_linear(w2, b2, g2, be2, m2, v2)
    w3f = w3.astype(jnp.float32)
    b3f = b3.astype(jnp.float32)

    if use_bf16:
        # Halves HBM read traffic; accumulation stays f32 inside the kernel.
        x = x.astype(jnp.bfloat16)
        w1f = w1f.astype(jnp.bfloat16)
        w2f = w2f.astype(jnp.bfloat16)
        w3f = w3f.astype(jnp.bfloat16)
    else:
        x = x.astype(jnp.float32)

    # Biases as [1, N] rows so they broadcast over the batch (sublane) axis.
    b1f = b1f.reshape(1, -1)
    b2f = b2f.reshape(1, -1)
    b3f = b3f.reshape(1, -1)

    B = x.shape[0]
    n_tiles, tile_b = _choose_tiling(B, max_tile_b)
    B_pad = n_tiles * tile_b
    if B_pad != B:
        # Tiny tail-only pad (< 8 rows per tile) — no longer a full copy of x.
        x = jnp.pad(x, ((0, B_pad - B), (0, 0)))

    # Weights/biases: full-array blocks with constant index_map -> VMEM-resident.
    resident = lambda arr: pl.BlockSpec(arr.shape, lambda i: (0, 0))

    flops = 2 * B_pad * (D_IN * D_H1 + D_H1 * D_H2 + D_H2 * D_OUT)
    bytes_accessed = (
        x.size * x.dtype.itemsize
        + B_pad * D_OUT * 4
        + sum(int(a.size) * a.dtype.itemsize
              for a in (w1f, b1f, w2f, b2f, w3f, b3f)))

    out = pl.pallas_call(
        net_kernel,
        out_shape=jax.ShapeDtypeStruct((B_pad, D_OUT), jnp.float32),
        grid=(n_tiles,),
        in_specs=[
            pl.BlockSpec((tile_b, D_IN), lambda i: (i, 0)),   # x: tiled over batch
            resident(w1f), resident(b1f),
            resident(w2f), resident(b2f),
            resident(w3f), resident(b3f),
        ],
        out_specs=pl.BlockSpec((tile_b, D_OUT), lambda i: (i, 0)),
        compiler_params=pltpu.CompilerParams(
            dimension_semantics=("parallel",),
            vmem_limit_bytes=VMEM_LIMIT_BYTES),
        cost_estimate=pl.CostEstimate(
            flops=flops, transcendentals=0, bytes_accessed=bytes_accessed),
    )(x, w1f, b1f, w2f, b2f, w3f, b3f)

    return out if B_pad == B else out[:B]


def init_params(key):
    """Parameter init mirroring Net.weight_init():
    kaiming_uniform_ Linear weights, zero Linear biases, BN weight=1 / bias=0.
    Running stats are perturbed away from the (0, 1) defaults so the BN-fold
    path is actually exercised by the correctness check."""
    def kaiming_uniform(k, out_f, in_f):
        bound = jnp.sqrt(6.0 / in_f)          # gain=sqrt(2), bound=gain*sqrt(3/fan_in)
        w = jax.random.uniform(k, (out_f, in_f), jnp.float32, -bound, bound)
        return w.T                            # pre-transpose -> [in_f, out_f]

    k1, k2, k3, k4, k5, k6, k7 = jax.random.split(key, 7)
    w1 = kaiming_uniform(k1, D_H1, D_IN)
    w2 = kaiming_uniform(k2, D_H2, D_H1)
    w3 = kaiming_uniform(k3, D_OUT, D_H2)

    b1 = jnp.zeros((D_H1,), jnp.float32)
    b2 = jnp.zeros((D_H2,), jnp.float32)
    b3 = jnp.zeros((D_OUT,), jnp.float32)

    g1, be1 = jnp.ones((D_H1,), jnp.float32), jnp.zeros((D_H1,), jnp.float32)
    g2, be2 = jnp.ones((D_H2,), jnp.float32), jnp.zeros((D_H2,), jnp.float32)

    # Non-trivial running stats (as if the net had seen data) to test the fold.
    m1 = 0.1 * jax.random.normal(k4, (D_H1,), jnp.float32)
    v1 = jax.random.uniform(k5, (D_H1,), jnp.float32, 0.5, 1.5)
    m2 = 0.1 * jax.random.normal(k6, (D_H2,), jnp.float32)
    v2 = jax.random.uniform(k7, (D_H2,), jnp.float32, 0.5, 1.5)

    return (w1, b1, g1, be1, m1, v1,
            w2, b2, g2, be2, m2, v2,
            w3, b3)


def reference_forward(x, params):
    """Pure-JAX reference of the PyTorch Net in eval mode (unfolded BN)."""
    (w1, b1, g1, be1, m1, v1,
     w2, b2, g2, be2, m2, v2,
     w3, b3) = params
    h = x @ w1 + b1
    h = (h - m1) * (g1 / jnp.sqrt(v1 + EPS)) + be1
    h = jnp.maximum(h, 0.0)
    h = h @ w2 + b2
    h = (h - m2) * (g2 / jnp.sqrt(v2 + EPS)) + be2
    h = jnp.maximum(h, 0.0)
    return h @ w3 + b3


if __name__ == "__main__":
    key = jax.random.PRNGKey(0)
    kx, kx2, kp = jax.random.split(key, 3)
    params = init_params(kp)

    # 1) Small single-tile batch.
    x_small = jax.random.normal(kx, (8, D_IN), jnp.float32)
    out_small = jax.block_until_ready(net_forward(x_small, params))
    ref_small = reference_forward(x_small, params)
    assert out_small.shape == (8, D_OUT), out_small.shape
    assert jnp.allclose(out_small, ref_small, atol=1e-4, rtol=1e-4), \
        "mismatch vs reference (single tile)"

    # 2) Multi-tile ragged batch (B not a multiple of the tile): exercises the
    #    grid + tail-padding path.  Force a small max tile so several grid
    #    steps run even at this small test size.
    x_big = jax.random.normal(kx2, (300, D_IN), jnp.float32)
    out_big = jax.block_until_ready(net_forward(x_big, params, max_tile_b=128))
    ref_big = reference_forward(x_big, params)
    assert out_big.shape == (300, D_OUT), out_big.shape
    assert jnp.allclose(out_big, ref_big, atol=1e-4, rtol=1e-4), \
        "mismatch vs reference (multi-tile ragged)"

    # 3) bf16 input/weight path (half the HBM read traffic) — looser tolerance.
    out_bf16 = jax.block_until_ready(
        net_forward(x_big, params, max_tile_b=128, use_bf16=True))
    assert jnp.allclose(out_bf16, ref_big, atol=2e-1, rtol=1e-1), \
        "mismatch vs reference (bf16 path)"

    print("KERNEL_OK")
</pallas_src>

<mosaic_0001>
module attributes {stable_mosaic.version = 11 : i64} {
  func.func @net_kernel(%arg0: i32, %arg1: memref<8x16xf32, #tpu.memory_space<vmem>>, %arg2: memref<16x24xf32, #tpu.memory_space<vmem>>, %arg3: memref<1x24xf32, #tpu.memory_space<vmem>>, %arg4: memref<24x12xf32, #tpu.memory_space<vmem>>, %arg5: memref<1x12xf32, #tpu.memory_space<vmem>>, %arg6: memref<12x10xf32, #tpu.memory_space<vmem>>, %arg7: memref<1x10xf32, #tpu.memory_space<vmem>>, %arg8: memref<8x10xf32, #tpu.memory_space<vmem>>) attributes {dimension_semantics = [#tpu.dimension_semantics<parallel>], iteration_bounds = array<i64: 1>, scalar_prefetch = 0 : i64, scratch_operands = 0 : i64, tpu.core_type = #tpu.core_type<tc>, window_params = [{transform_indices = @transform_0, window_bounds = array<i64: 8, 16>}, {pipeline_mode = #tpu.pipeline_mode<synchronous>, transform_indices = @transform_1, window_bounds = array<i64: 16, 24>}, {pipeline_mode = #tpu.pipeline_mode<synchronous>, transform_indices = @transform_2, window_bounds = array<i64: 1, 24>}, {pipeline_mode = #tpu.pipeline_mode<synchronous>, transform_indices = @transform_3, window_bounds = array<i64: 24, 12>}, {pipeline_mode = #tpu.pipeline_mode<synchronous>, transform_indices = @transform_4, window_bounds = array<i64: 1, 12>}, {pipeline_mode = #tpu.pipeline_mode<synchronous>, transform_indices = @transform_5, window_bounds = array<i64: 12, 10>}, {pipeline_mode = #tpu.pipeline_mode<synchronous>, transform_indices = @transform_6, window_bounds = array<i64: 1, 10>}, {transform_indices = @transform_7, window_bounds = array<i64: 8, 10>}]} {
    %c0 = arith.constant 0 : index
    %c0_0 = arith.constant 0 : index
    %0 = vector.load %arg1[%c0, %c0_0] : memref<8x16xf32, #tpu.memory_space<vmem>>, vector<8x16xf32>
    %c0_1 = arith.constant 0 : index
    %c0_2 = arith.constant 0 : index
    %1 = vector.load %arg2[%c0_1, %c0_2] : memref<16x24xf32, #tpu.memory_space<vmem>>, vector<16x24xf32>
    %cst = arith.constant dense<0.000000e+00> : vector<8x24xf32>
    %2 = tpu.matmul %0, %1, %cst {dimension_numbers = #tpu.dot_dimension_numbers<[1], [0], [0], [1], [0, 0, 1, 1], [], []>} : vector<8x16xf32>, vector<16x24xf32>, vector<8x24xf32> -> vector<8x24xf32>
    %c0_3 = arith.constant 0 : index
    %c0_4 = arith.constant 0 : index
    %3 = vector.load %arg3[%c0_3, %c0_4] : memref<1x24xf32, #tpu.memory_space<vmem>>, vector<1x24xf32>
    %4 = vector.broadcast %3 : vector<1x24xf32> to vector<8x24xf32>
    %5 = arith.addf %2, %4 : vector<8x24xf32>
    %cst_5 = arith.constant 0.000000e+00 : f32
    %6 = vector.broadcast %cst_5 : f32 to vector<8x24xf32>
    %7 = arith.maximumf %5, %6 : vector<8x24xf32>
    %c0_6 = arith.constant 0 : index
    %c0_7 = arith.constant 0 : index
    %8 = vector.load %arg4[%c0_6, %c0_7] : memref<24x12xf32, #tpu.memory_space<vmem>>, vector<24x12xf32>
    %cst_8 = arith.constant dense<0.000000e+00> : vector<8x12xf32>
    %9 = tpu.matmul %7, %8, %cst_8 {dimension_numbers = #tpu.dot_dimension_numbers<[1], [0], [0], [1], [0, 0, 1, 1], [], []>} : vector<8x24xf32>, vector<24x12xf32>, vector<8x12xf32> -> vector<8x12xf32>
    %c0_9 = arith.constant 0 : index
    %c0_10 = arith.constant 0 : index
    %10 = vector.load %arg5[%c0_9, %c0_10] : memref<1x12xf32, #tpu.memory_space<vmem>>, vector<1x12xf32>
    %11 = vector.broadcast %10 : vector<1x12xf32> to vector<8x12xf32>
    %12 = arith.addf %9, %11 : vector<8x12xf32>
    %cst_11 = arith.constant 0.000000e+00 : f32
    %13 = vector.broadcast %cst_11 : f32 to vector<8x12xf32>
    %14 = arith.maximumf %12, %13 : vector<8x12xf32>
    %c0_12 = arith.constant 0 : index
    %c0_13 = arith.constant 0 : index
    %15 = vector.load %arg6[%c0_12, %c0_13] : memref<12x10xf32, #tpu.memory_space<vmem>>, vector<12x10xf32>
    %cst_14 = arith.constant dense<0.000000e+00> : vector<8x10xf32>
    %16 = tpu.matmul %14, %15, %cst_14 {dimension_numbers = #tpu.dot_dimension_numbers<[1], [0], [0], [1], [0, 0, 1, 1], [], []>} : vector<8x12xf32>, vector<12x10xf32>, vector<8x10xf32> -> vector<8x10xf32>
    %c0_15 = arith.constant 0 : index
    %c0_16 = arith.constant 0 : index
    %17 = vector.load %arg7[%c0_15, %c0_16] : memref<1x10xf32, #tpu.memory_space<vmem>>, vector<1x10xf32>
    %18 = vector.broadcast %17 : vector<1x10xf32> to vector<8x10xf32>
    %19 = arith.addf %16, %18 : vector<8x10xf32>
    %c0_17 = arith.constant 0 : index
    %c0_18 = arith.constant 0 : index
    %20 = vector.load %arg8[%c0_17, %c0_18] : memref<8x10xf32, #tpu.memory_space<vmem>>, vector<8x10xf32>
    tpu.vector_store %arg8[%c0_17, %c0_18], %19 {strides = array<i32>} : memref<8x10xf32, #tpu.memory_space<vmem>>, vector<8x10xf32>,
    return
  }
  func.func @transform_0(%arg0: i32) -> (i32, i32) {
    %c0_i32 = arith.constant 0 : i32
    %c0_i32_0 = arith.constant 0 : i32
    return %arg0, %c0_i32 : i32, i32
  }
  func.func @transform_1(%arg0: i32) -> (i32, i32) {
    %c0_i32 = arith.constant 0 : i32
    %c0_i32_0 = arith.constant 0 : i32
    %c0_i32_1 = arith.constant 0 : i32
    return %c0_i32, %c0_i32_0 : i32, i32
  }
  func.func @transform_2(%arg0: i32) -> (i32, i32) {
    %c0_i32 = arith.constant 0 : i32
    %c0_i32_0 = arith.constant 0 : i32
    %c0_i32_1 = arith.constant 0 : i32
    return %c0_i32, %c0_i32_0 : i32, i32
  }
  func.func @transform_3(%arg0: i32) -> (i32, i32) {
    %c0_i32 = arith.constant 0 : i32
    %c0_i32_0 = arith.constant 0 : i32
    %c0_i32_1 = arith.constant 0 : i32
    return %c0_i32, %c0_i32_0 : i32, i32
  }
  func.func @transform_4(%arg0: i32) -> (i32, i32) {
    %c0_i32 = arith.constant 0 : i32
    %c0_i32_0 = arith.constant 0 : i32
    %c0_i32_1 = arith.constant 0 : i32
    return %c0_i32, %c0_i32_0 : i32, i32
  }
  func.func @transform_5(%arg0: i32) -> (i32, i32) {
    %c0_i32 = arith.constant 0 : i32
    %c0_i32_0 = arith.constant 0 : i32
    %c0_i32_1 = arith.constant 0 : i32
    return %c0_i32, %c0_i32_0 : i32, i32
  }
  func.func @transform_6(%arg0: i32) -> (i32, i32) {
    %c0_i32 = arith.constant 0 : i32
    %c0_i32_0 = arith.constant 0 : i32
    %c0_i32_1 = arith.constant 0 : i32
    return %c0_i32, %c0_i32_0 : i32, i32
  }
  func.func @transform_7(%arg0: i32) -> (i32, i32) {
    %c0_i32 = arith.constant 0 : i32
    %c0_i32_0 = arith.constant 0 : i32
    return %arg0, %c0_i32 : i32, i32
  }
}

</mosaic_0001>

<bundles_post_ra>
// kernel: tpu_custom_call.1
= control target key start
LH: loop header
LB: loop body
LE: loop exit
PB: predicated region body
PF: predicated region fallthrough
CT: control target
= control target key end

     0   :  { %v379_v2 = vmov 0.0|0.0   ;;  %vm380_vm0 = vmmov 0   ;;  %v381_v4 = vmov 0.0   ;;  %s469_s0 = inlined_call_operand.vmem [shape: f32[8,16], index: 0, kind: input, shape index: {}]   ;;  %s470_s1 = inlined_call_operand.vmem [shape: f32[16,24], index: 1, kind: input, shape index: {}]   ;;  %s471_s2 = inlined_call_operand.vmem [shape: f32[1,24], index: 2, kind: input, shape index: {}]   ;;  %s472_s3 = inlined_call_operand.vmem [shape: f32[24,12], index: 3, kind: input, shape index: {}]   ;;  %s473_s4 = inlined_call_operand.vmem [shape: f32[1,12], index: 4, kind: input, shape index: {}]   ;;  %s474_s5 = inlined_call_operand.vmem [shape: f32[12,10], index: 5, kind: input, shape index: {}]   ;;  %s475_s6 = inlined_call_operand.vmem [shape: f32[1,10], index: 6, kind: input, shape index: {}]   ;;  %s476_s7 = inlined_call_operand.hbm [shape: f32[8,10], index: 7, kind: output, shape index: {}]  }
   0x1   :  { %v28_v0 = vld [vmem:[%s470_s1] sm:$0xff]  ;;  %v29_v1 = vld [vmem:[%s470_s1 + $0x8] sm:$0xff]  ;;  %340 = vmatprep.subr.bf16.mxu0 %v379_v2  ;;  %321 = vmatprep.mubr.msk.f32.mxu0 %vm380_vm0, %v381_v4 }
   0x2   :  { %v341_v3 = vpack.c.bf16 %v29_v1, %v28_v0 }
   0x3   :  { %12 = vsyncpa [#allocation3], 0  ;;  %343 = vmatprep.subr.bf16.mxu1 %v379_v2  ;;  %330 = vmatprep.mubr.msk.f32.mxu1 %vm380_vm0, %v381_v4  ;;  %v27_v5 = vld [vmem:[%s469_s0] sm:$0xff]  ;;  %vm37_vm1 = vcmask 130048   ;;  %v113_v7 = vld [vmem:[%s472_s3 + $0x8] sm:$0xff]  ;;  %vm122_vm2 = vcmask 195584  }
   0x4   :  { %342 = vmatpush3.bf16.msra.mxu0 %v341_v3  ;;  %v112_v6 = vld [vmem:[%s472_s3] sm:$0xff]  ;;  %v114_v9 = vld [vmem:[%s472_s3 + $0x10] sm:$0xff]  ;;  %v198_v16 = vld [vmem:[%s474_s5 + $0x8] sm:$0xf]  ;;  %vm210_vm3 = vcmask 1043456   ;;  %vm382_vm4 = vmmov 1  }
   0x5   :  { %346 = vmatprep.subr.bf16.mxu0 %v379_v2  ;;  %v344_v8 = vpack.c.bf16 %v113_v7, %v112_v6  ;;  %v300_v10 = vld [vmem:[%s471_s2] ss:$0 sm:$0xff]  ;;  %vm348_vm5 = vmpackc.low %vm210_vm3, %vm382_vm4  ;;  %vm206_vm6 = vcmask 97280   ;;  %vm284_vm7 = vcmask 80896  }
   0x6   :  { %v197_v15 = vld [vmem:[%s474_s5] sm:$0xff]  ;;  %s383_s5 = smov [#allocation2]  }
   0x7   :  { %322 = vmatmul.mubr.msk.f32.vlgmr.msra.gmra.mrb[0].mxu0 %vm37_vm1, %v27_v5  ;;  %345 = vmatpush3.bf16.msra.mxu1 %v344_v8  ;;  %v347_v17 = vpack.c.bf16 %v198_v16, %v197_v15  ;;  %v302_v18 = vld [vmem:[%s473_s4] ss:$0 sm:$0xff]  ;;  %s292_s19 = sshll.u32 %s383_s5, 4  ;;  %s293_s19 = int_to_ptr.vmem [resolvable:$true] %s292_s19 }
   0x8   :  { %337 = vmatprep.mubr.msk.f32.mxu0 %vm380_vm0, %v381_v4  ;;  %328 = vmatprep.subr.mxu1 %v381_v4  ;;  %v304_v23 = vld [vmem:[%s475_s6] ss:$0 sm:$0xff]  ;;  %s355_s20 = scalar_lea.vmem %s293_s19, 128  ;;  %p360_p1 = scmp.lt.s32.totalorder %s293_s19, %s293_s19 }
   0x9   :  { %349 = vmatpush3.bf16.msk.msra.mxu0 %vm348_vm5, %v347_v17  ;;  %p356_p0 = scmp.ne.s32.totalorder %s293_s19, %s355_s20  ;;  %p361_p2 = scmp.lt.s32.totalorder %s355_s20, %s355_s20 }
   0xb   :  { %329 = vmatpush3.msra.mxu1 %v114_v9  ;;  %p362_p3 = por %p361_p2, %p360_p1 }
   0xd   :  { %p363_p4 = pnand %p362_p3, %p356_p0 }
  0xda   :  { %v107_v11 = vpop.f32.mrb[0].mxu0 }
  0xdb   :  { %v108_v12 = vadd.f32 %v300_v10, %v107_v11  ;;  %v323_v13 = vpop.f32.mrb[1].mxu0 }
  0xdd   :  { %v111_v14 = vmax.f32 %v108_v12, 0.0 }
  0xdf   :  { %331 = vmatmul.mubr.msk.f32.vlgmr.msra.gmra.mrb[0].mxu1 %vm122_vm2, %v111_v14 }
 0x1b2   :  { %v192_v19 = vpop.f32.mrb[0].mxu1 }
 0x1b3   :  { %v193_v20 = vadd.f32 %v302_v18, %v192_v19  ;;  %v332_v21 = vpop.f32.mrb[1].mxu1 }
 0x1b5   :  { %v196_v22 = vmax.f32 %v193_v20, 0.0 }
 0x1b7   :  { %338 = vmatmul.mubr.msk.f32.vlgmr.msra.gmra.mrb[2].mxu0 %vm206_vm6, %v196_v22 }
 0x28a   :  { %v280_v24 = vpop.f32.mrb[2].mxu0 }
 0x28b   :  { %v281_v25 = vadd.f32 %v304_v23, %v280_v24  ;;  %v339_v26 = vpop.f32.mrb[3].mxu0 }
 0x28d   :  { %285 = vst.msk [vmem:[#allocation2] sm:$0xff] %vm284_vm7, %v281_v25 }
 0x28e   :  { %366 = shalt.err (!%p363_p4)
}
 0x28f   :  { %s367_s22 = scalar_lea.hbm %s476_s7, 128 }
 0x290   :  { %p368_p5 = scmp.ne.s32.totalorder %s476_s7, %s367_s22  ;;  %p371_p6 = scmp.lt.u32.totalorder %s367_s22, %s476_s7 }
 0x292   :  { %p373_p7 = pnand %p371_p6, %p368_p5 }
 0x294   :  { %376 = shalt.err (!%p373_p7)
}
 0x295   :  { %295 = dma.vmem_to_hbm [thread:$0]  %s293_s19, 128, %s476_s7, [#allocation3]  }
 0x296   :  { %377 = dma.done.wait [#allocation3], 128  }
 0x297   :  { %378 = vsyncadd [#allocation3], 4294967168 }
 0x298   :  { %299 = vsyncpa [#allocation3], 1 }

</bundles_post_ra>
